<compile_context>
chip_gen: v5e
topology: v5e:2x2
jax: 0.10.0
libtpu: 0.0.40
codegen_flags: <defaults>
</compile_context>

<pallas_src>
import jax
import jax.numpy as jnp
from jax.experimental import pallas as pl
from jax.experimental.pallas import tpu as pltpu

_SUBLANE = 8


def _round_up(n, m):
    return ((n + m - 1) // m) * m


def _vmem_cap_bytes():
    """Generation-aware VMEM cap (~85% of physical), with a conservative
    fallback that is safe on v7x's 64 MiB per-TensorCore VMEM."""
    try:
        return int(pltpu.get_tpu_info().vmem_capacity_bytes * 0.85)
    except Exception:
        return 48 << 20


def mlp_kernel(x_ref, w1_ref, b1_ref, w2_ref, b2_ref, w3_ref, b3_ref, o_ref):
    # fc1 + relu: f32 MXU accumulation, elementwise math in f32.
    h1 = jnp.dot(x_ref[...], w1_ref[...], preferred_element_type=jnp.float32)
    h1 = jnp.maximum(h1 + b1_ref[...], 0.0)
    # fc2 + relu
    h2 = jnp.dot(h1.astype(w2_ref.dtype), w2_ref[...],
                 preferred_element_type=jnp.float32)
    h2 = jnp.maximum(h2 + b2_ref[...], 0.0)
    # fc3 (no activation)
    out = jnp.dot(h2.astype(w3_ref.dtype), w3_ref[...],
                  preferred_element_type=jnp.float32)
    o_ref[...] = (out + b3_ref[...]).astype(o_ref.dtype)


def prepare_params(w1, b1, w2, b2, w3, b3, *, matmul_dtype=None):
    """One-time parameter preparation (hoisted out of the forward).

    Takes torch-layout params (W_i: (out, in), b_i: (out,)) and returns the
    kernel layout: weights pre-transposed to (in, out) so the kernel computes
    x @ W (== torch's x @ W.T), biases as (1, out) f32 rows.  Optionally
    narrows the weights for the MXU (e.g. jnp.bfloat16 on v6e/v7x); bias add,
    ReLU and accumulation stay f32.
    """
    def prep_w(w):
        w = jnp.asarray(w).T
        return w if matmul_dtype is None else w.astype(matmul_dtype)

    def prep_b(b):
        return jnp.asarray(b).reshape(1, -1).astype(jnp.float32)

    return (prep_w(w1), prep_b(b1), prep_w(w2), prep_b(b2),
            prep_w(w3), prep_b(b3))


def fully_connected_nn(x, params, *, batch_tile=512, matmul_dtype=None):
    """Forward pass of FullyConnectedNN as one fused Pallas kernel.

    x: (B, input_size).  params: output of prepare_params().
    batch_tile: max rows per grid step (rounded to a multiple of 8).
    """
    w1, b1, w2, b2, w3, b3 = params
    B, K = x.shape
    H1, H2, OUT = w1.shape[1], w2.shape[1], w3.shape[1]
    out_dtype = x.dtype
    if matmul_dtype is not None:
        x = x.astype(matmul_dtype)

    # ---- batch tiling: never round B up; ragged last block is masked. ------
    batch_tile = max(_SUBLANE, _round_up(batch_tile, _SUBLANE))
    if B > batch_tile:
        tb = batch_tile
    elif B >= 2 * _SUBLANE:
        # Split so the "parallel" batch axis has >= 2 steps (feeds both
        # TensorCores on v7x and gives the pipeline DMA to overlap).
        tb = min(B, _round_up(pl.cdiv(B, 2), _SUBLANE))
    else:
        tb = B                      # single step; block dim == full array dim
    grid = (pl.cdiv(B, tb),)

    # Activation tiles march down the batch axis at their TRUE feature widths
    # (full-array-dim blocks satisfy the (8,128) rule without padding).
    x_spec = pl.BlockSpec((tb, K), lambda i: (i, 0))
    o_spec = pl.BlockSpec((tb, OUT), lambda i: (i, 0))

    # Constant index_map -> weights/biases DMA'd once, stay VMEM-resident.
    def const_spec(a, single_buffer):
        if single_buffer:
            return pl.BlockSpec(a.shape, lambda i: (0, 0),
                                pipeline_mode=pl.Buffered(1))
        return pl.BlockSpec(a.shape, lambda i: (0, 0))

    itemsize_x = x.dtype.itemsize
    itemsize_o = jnp.dtype(out_dtype).itemsize
    param_bytes = sum(a.size * a.dtype.itemsize
                      for a in (w1, b1, w2, b2, w3, b3))
    flops = 2 * B * (K * H1 + H1 * H2 + H2 * OUT)
    bytes_accessed = B * K * itemsize_x + B * OUT * itemsize_o + param_bytes
    cost = pl.CostEstimate(flops=flops, transcendentals=0,
                           bytes_accessed=bytes_accessed)

    def call(single_buffer_params):
        # VMEM budget from the actual allocation: double-buffered activation
        # tiles + (single- or double-buffered) resident params + f32
        # intermediates + headroom; capped generation-aware (v7x = 64 MiB).
        act_bytes = 2 * tb * (K * itemsize_x + OUT * itemsize_o)
        interm_bytes = 2 * 4 * tb * (H1 + H2 + OUT)
        pmult = 1 if single_buffer_params else 2
        need = act_bytes + pmult * param_bytes + interm_bytes + (4 << 20)
        vmem_limit = max(16 << 20, min(need, _vmem_cap_bytes()))

        in_specs = [x_spec] + [const_spec(a, single_buffer_params)
                               for a in (w1, b1, w2, b2, w3, b3)]
        return pl.pallas_call(
            mlp_kernel,
            out_shape=jax.ShapeDtypeStruct((B, OUT), out_dtype),
            grid=grid,
            in_specs=in_specs,
            out_specs=o_spec,
            compiler_params=pltpu.CompilerParams(
                dimension_semantics=("parallel",),
                vmem_limit_bytes=int(vmem_limit)),
            cost_estimate=cost,
        )(x, w1, b1, w2, b2, w3, b3)

    # TODO(synk): for hidden dims whose resident weights exceed ~half the
    # usable VMEM (esp. v7x), add a reduction-axis grid with an f32 accumulator
    # (or per-layer kernels) instead of fully-resident weights; fp8 weight
    # operands on v7x are likewise not implemented here.
    try:
        return call(single_buffer_params=True)
    except Exception:
        # This jax build rejected single-buffered constant blocks; fall back
        # to default double buffering (identical results).
        return call(single_buffer_params=False)


def reference_forward(x, params):
    w1, b1, w2, b2, w3, b3 = params
    h = jnp.maximum(x @ w1 + b1, 0.0)
    h = jnp.maximum(h @ w2 + b2, 0.0)
    return h @ w3 + b3


if __name__ == "__main__":
    # FullyConnectedNN(input_size=32, hidden_size1=64, hidden_size2=64,
    #                  output_size=16), torch-layout parameters.
    input_size, hidden1, hidden2, output_size = 32, 64, 64, 16

    keys = jax.random.split(jax.random.PRNGKey(0), 7)
    w1 = jax.random.normal(keys[1], (hidden1, input_size), jnp.float32) * 0.1
    b1 = jax.random.normal(keys[2], (hidden1,), jnp.float32) * 0.1
    w2 = jax.random.normal(keys[3], (hidden2, hidden1), jnp.float32) * 0.1
    b2 = jax.random.normal(keys[4], (hidden2,), jnp.float32) * 0.1
    w3 = jax.random.normal(keys[5], (output_size, hidden2), jnp.float32) * 0.1
    b3 = jax.random.normal(keys[6], (output_size,), jnp.float32) * 0.1

    # One-time parameter prep (hoisted out of the per-call path).
    params = prepare_params(w1, b1, w2, b2, w3, b3)

    # Case 1: small batch -> single grid step, block dims == full array dims.
    x = jax.random.normal(keys[0], (8, input_size), jnp.float32)
    out = jax.block_until_ready(fully_connected_nn(x, params))
    ref = reference_forward(x, params)
    assert out.shape == (8, output_size)
    assert jnp.allclose(out, ref, atol=1e-3, rtol=1e-3)

    # Case 2: larger, non-multiple batch -> grid of 2 "parallel" steps with a
    # ragged last block (no batch padding, no wrapper pad/slice round trips).
    x2 = jax.random.normal(jax.random.PRNGKey(1), (300, input_size), jnp.float32)
    out2 = jax.block_until_ready(fully_connected_nn(x2, params))
    ref2 = reference_forward(x2, params)
    assert out2.shape == (300, output_size)
    assert jnp.allclose(out2, ref2, atol=1e-3, rtol=1e-3)

    print("KERNEL_OK")
</pallas_src>

<mosaic_0001>
module attributes {stable_mosaic.version = 11 : i64} {
  func.func @mlp_kernel(%arg0: i32, %arg1: memref<8x32xf32, #tpu.memory_space<vmem>>, %arg2: memref<32x64xf32, #tpu.memory_space<vmem>>, %arg3: memref<1x64xf32, #tpu.memory_space<vmem>>, %arg4: memref<64x64xf32, #tpu.memory_space<vmem>>, %arg5: memref<1x64xf32, #tpu.memory_space<vmem>>, %arg6: memref<64x16xf32, #tpu.memory_space<vmem>>, %arg7: memref<1x16xf32, #tpu.memory_space<vmem>>, %arg8: memref<8x16xf32, #tpu.memory_space<vmem>>) attributes {dimension_semantics = [#tpu.dimension_semantics<parallel>], iteration_bounds = array<i64: 1>, scalar_prefetch = 0 : i64, scratch_operands = 0 : i64, tpu.core_type = #tpu.core_type<tc>, window_params = [{transform_indices = @transform_0, window_bounds = array<i64: 8, 32>}, {pipeline_mode = #tpu.pipeline_mode<synchronous>, transform_indices = @transform_1, window_bounds = array<i64: 32, 64>}, {pipeline_mode = #tpu.pipeline_mode<synchronous>, transform_indices = @transform_2, window_bounds = array<i64: 1, 64>}, {pipeline_mode = #tpu.pipeline_mode<synchronous>, transform_indices = @transform_3, window_bounds = array<i64: 64, 64>}, {pipeline_mode = #tpu.pipeline_mode<synchronous>, transform_indices = @transform_4, window_bounds = array<i64: 1, 64>}, {pipeline_mode = #tpu.pipeline_mode<synchronous>, transform_indices = @transform_5, window_bounds = array<i64: 64, 16>}, {pipeline_mode = #tpu.pipeline_mode<synchronous>, transform_indices = @transform_6, window_bounds = array<i64: 1, 16>}, {transform_indices = @transform_7, window_bounds = array<i64: 8, 16>}]} {
    %c0 = arith.constant 0 : index
    %c0_0 = arith.constant 0 : index
    %0 = vector.load %arg1[%c0, %c0_0] : memref<8x32xf32, #tpu.memory_space<vmem>>, vector<8x32xf32>
    %c0_1 = arith.constant 0 : index
    %c0_2 = arith.constant 0 : index
    %1 = vector.load %arg2[%c0_1, %c0_2] : memref<32x64xf32, #tpu.memory_space<vmem>>, vector<32x64xf32>
    %cst = arith.constant dense<0.000000e+00> : vector<8x64xf32>
    %2 = tpu.matmul %0, %1, %cst {dimension_numbers = #tpu.dot_dimension_numbers<[1], [0], [0], [1], [0, 0, 1, 1], [], []>} : vector<8x32xf32>, vector<32x64xf32>, vector<8x64xf32> -> vector<8x64xf32>
    %c0_3 = arith.constant 0 : index
    %c0_4 = arith.constant 0 : index
    %3 = vector.load %arg3[%c0_3, %c0_4] : memref<1x64xf32, #tpu.memory_space<vmem>>, vector<1x64xf32>
    %4 = vector.broadcast %3 : vector<1x64xf32> to vector<8x64xf32>
    %5 = arith.addf %2, %4 : vector<8x64xf32>
    %cst_5 = arith.constant 0.000000e+00 : f32
    %6 = vector.broadcast %cst_5 : f32 to vector<8x64xf32>
    %7 = arith.maximumf %5, %6 : vector<8x64xf32>
    %c0_6 = arith.constant 0 : index
    %c0_7 = arith.constant 0 : index
    %8 = vector.load %arg4[%c0_6, %c0_7] : memref<64x64xf32, #tpu.memory_space<vmem>>, vector<64x64xf32>
    %cst_8 = arith.constant dense<0.000000e+00> : vector<8x64xf32>
    %9 = tpu.matmul %7, %8, %cst_8 {dimension_numbers = #tpu.dot_dimension_numbers<[1], [0], [0], [1], [0, 0, 1, 1], [], []>} : vector<8x64xf32>, vector<64x64xf32>, vector<8x64xf32> -> vector<8x64xf32>
    %c0_9 = arith.constant 0 : index
    %c0_10 = arith.constant 0 : index
    %10 = vector.load %arg5[%c0_9, %c0_10] : memref<1x64xf32, #tpu.memory_space<vmem>>, vector<1x64xf32>
    %11 = vector.broadcast %10 : vector<1x64xf32> to vector<8x64xf32>
    %12 = arith.addf %9, %11 : vector<8x64xf32>
    %cst_11 = arith.constant 0.000000e+00 : f32
    %13 = vector.broadcast %cst_11 : f32 to vector<8x64xf32>
    %14 = arith.maximumf %12, %13 : vector<8x64xf32>
    %c0_12 = arith.constant 0 : index
    %c0_13 = arith.constant 0 : index
    %15 = vector.load %arg6[%c0_12, %c0_13] : memref<64x16xf32, #tpu.memory_space<vmem>>, vector<64x16xf32>
    %cst_14 = arith.constant dense<0.000000e+00> : vector<8x16xf32>
    %16 = tpu.matmul %14, %15, %cst_14 {dimension_numbers = #tpu.dot_dimension_numbers<[1], [0], [0], [1], [0, 0, 1, 1], [], []>} : vector<8x64xf32>, vector<64x16xf32>, vector<8x16xf32> -> vector<8x16xf32>
    %c0_15 = arith.constant 0 : index
    %c0_16 = arith.constant 0 : index
    %17 = vector.load %arg7[%c0_15, %c0_16] : memref<1x16xf32, #tpu.memory_space<vmem>>, vector<1x16xf32>
    %18 = vector.broadcast %17 : vector<1x16xf32> to vector<8x16xf32>
    %19 = arith.addf %16, %18 : vector<8x16xf32>
    %c0_17 = arith.constant 0 : index
    %c0_18 = arith.constant 0 : index
    %20 = vector.load %arg8[%c0_17, %c0_18] : memref<8x16xf32, #tpu.memory_space<vmem>>, vector<8x16xf32>
    tpu.vector_store %arg8[%c0_17, %c0_18], %19 {strides = array<i32>} : memref<8x16xf32, #tpu.memory_space<vmem>>, vector<8x16xf32>,
    return
  }
  func.func @transform_0(%arg0: i32) -> (i32, i32) {
    %c0_i32 = arith.constant 0 : i32
    %c0_i32_0 = arith.constant 0 : i32
    return %arg0, %c0_i32 : i32, i32
  }
  func.func @transform_1(%arg0: i32) -> (i32, i32) {
    %c0_i32 = arith.constant 0 : i32
    %c0_i32_0 = arith.constant 0 : i32
    %c0_i32_1 = arith.constant 0 : i32
    return %c0_i32, %c0_i32_0 : i32, i32
  }
  func.func @transform_2(%arg0: i32) -> (i32, i32) {
    %c0_i32 = arith.constant 0 : i32
    %c0_i32_0 = arith.constant 0 : i32
    %c0_i32_1 = arith.constant 0 : i32
    return %c0_i32, %c0_i32_0 : i32, i32
  }
  func.func @transform_3(%arg0: i32) -> (i32, i32) {
    %c0_i32 = arith.constant 0 : i32
    %c0_i32_0 = arith.constant 0 : i32
    %c0_i32_1 = arith.constant 0 : i32
    return %c0_i32, %c0_i32_0 : i32, i32
  }
  func.func @transform_4(%arg0: i32) -> (i32, i32) {
    %c0_i32 = arith.constant 0 : i32
    %c0_i32_0 = arith.constant 0 : i32
    %c0_i32_1 = arith.constant 0 : i32
    return %c0_i32, %c0_i32_0 : i32, i32
  }
  func.func @transform_5(%arg0: i32) -> (i32, i32) {
    %c0_i32 = arith.constant 0 : i32
    %c0_i32_0 = arith.constant 0 : i32
    %c0_i32_1 = arith.constant 0 : i32
    return %c0_i32, %c0_i32_0 : i32, i32
  }
  func.func @transform_6(%arg0: i32) -> (i32, i32) {
    %c0_i32 = arith.constant 0 : i32
    %c0_i32_0 = arith.constant 0 : i32
    %c0_i32_1 = arith.constant 0 : i32
    return %c0_i32, %c0_i32_0 : i32, i32
  }
  func.func @transform_7(%arg0: i32) -> (i32, i32) {
    %c0_i32 = arith.constant 0 : i32
    %c0_i32_0 = arith.constant 0 : i32
    return %arg0, %c0_i32 : i32, i32
  }
}

module attributes {stable_mosaic.version = 11 : i64} {
  func.func @mlp_kernel(%arg0: i32, %arg1: memref<8x32xf32, #tpu.memory_space<vmem>>, %arg2: memref<32x64xf32, #tpu.memory_space<vmem>>, %arg3: memref<1x64xf32, #tpu.memory_space<vmem>>, %arg4: memref<64x64xf32, #tpu.memory_space<vmem>>, %arg5: memref<1x64xf32, #tpu.memory_space<vmem>>, %arg6: memref<64x16xf32, #tpu.memory_space<vmem>>, %arg7: memref<1x16xf32, #tpu.memory_space<vmem>>, %arg8: memref<8x16xf32, #tpu.memory_space<vmem>>) attributes {dimension_semantics = [#tpu.dimension_semantics<parallel>], iteration_bounds = array<i64: 1>, scalar_prefetch = 0 : i64, scratch_operands = 0 : i64, tpu.core_type = #tpu.core_type<tc>, window_params = [{transform_indices = @transform_0, window_bounds = array<i64: 8, 32>}, {pipeline_mode = #tpu.pipeline_mode<synchronous>, transform_indices = @transform_1, window_bounds = array<i64: 32, 64>}, {pipeline_mode = #tpu.pipeline_mode<synchronous>, transform_indices = @transform_2, window_bounds = array<i64: 1, 64>}, {pipeline_mode = #tpu.pipeline_mode<synchronous>, transform_indices = @transform_3, window_bounds = array<i64: 64, 64>}, {pipeline_mode = #tpu.pipeline_mode<synchronous>, transform_indices = @transform_4, window_bounds = array<i64: 1, 64>}, {pipeline_mode = #tpu.pipeline_mode<synchronous>, transform_indices = @transform_5, window_bounds = array<i64: 64, 16>}, {pipeline_mode = #tpu.pipeline_mode<synchronous>, transform_indices = @transform_6, window_bounds = array<i64: 1, 16>}, {transform_indices = @transform_7, window_bounds = array<i64: 8, 16>}]} {
    %c0 = arith.constant 0 : index
    %c0_0 = arith.constant 0 : index
    %0 = vector.load %arg1[%c0, %c0_0] : memref<8x32xf32, #tpu.memory_space<vmem>>, vector<8x32xf32>
    %c0_1 = arith.constant 0 : index
    %c0_2 = arith.constant 0 : index
    %1 = vector.load %arg2[%c0_1, %c0_2] : memref<32x64xf32, #tpu.memory_space<vmem>>, vector<32x64xf32>
    %cst = arith.constant dense<0.000000e+00> : vector<8x64xf32>
    %2 = tpu.matmul %0, %1, %cst {dimension_numbers = #tpu.dot_dimension_numbers<[1], [0], [0], [1], [0, 0, 1, 1], [], []>} : vector<8x32xf32>, vector<32x64xf32>, vector<8x64xf32> -> vector<8x64xf32>
    %c0_3 = arith.constant 0 : index
    %c0_4 = arith.constant 0 : index
    %3 = vector.load %arg3[%c0_3, %c0_4] : memref<1x64xf32, #tpu.memory_space<vmem>>, vector<1x64xf32>
    %4 = vector.broadcast %3 : vector<1x64xf32> to vector<8x64xf32>
    %5 = arith.addf %2, %4 : vector<8x64xf32>
    %cst_5 = arith.constant 0.000000e+00 : f32
    %6 = vector.broadcast %cst_5 : f32 to vector<8x64xf32>
    %7 = arith.maximumf %5, %6 : vector<8x64xf32>
    %c0_6 = arith.constant 0 : index
    %c0_7 = arith.constant 0 : index
    %8 = vector.load %arg4[%c0_6, %c0_7] : memref<64x64xf32, #tpu.memory_space<vmem>>, vector<64x64xf32>
    %cst_8 = arith.constant dense<0.000000e+00> : vector<8x64xf32>
    %9 = tpu.matmul %7, %8, %cst_8 {dimension_numbers = #tpu.dot_dimension_numbers<[1], [0], [0], [1], [0, 0, 1, 1], [], []>} : vector<8x64xf32>, vector<64x64xf32>, vector<8x64xf32> -> vector<8x64xf32>
    %c0_9 = arith.constant 0 : index
    %c0_10 = arith.constant 0 : index
    %10 = vector.load %arg5[%c0_9, %c0_10] : memref<1x64xf32, #tpu.memory_space<vmem>>, vector<1x64xf32>
    %11 = vector.broadcast %10 : vector<1x64xf32> to vector<8x64xf32>
    %12 = arith.addf %9, %11 : vector<8x64xf32>
    %cst_11 = arith.constant 0.000000e+00 : f32
    %13 = vector.broadcast %cst_11 : f32 to vector<8x64xf32>
    %14 = arith.maximumf %12, %13 : vector<8x64xf32>
    %c0_12 = arith.constant 0 : index
    %c0_13 = arith.constant 0 : index
    %15 = vector.load %arg6[%c0_12, %c0_13] : memref<64x16xf32, #tpu.memory_space<vmem>>, vector<64x16xf32>
    %cst_14 = arith.constant dense<0.000000e+00> : vector<8x16xf32>
    %16 = tpu.matmul %14, %15, %cst_14 {dimension_numbers = #tpu.dot_dimension_numbers<[1], [0], [0], [1], [0, 0, 1, 1], [], []>} : vector<8x64xf32>, vector<64x16xf32>, vector<8x16xf32> -> vector<8x16xf32>
    %c0_15 = arith.constant 0 : index
    %c0_16 = arith.constant 0 : index
    %17 = vector.load %arg7[%c0_15, %c0_16] : memref<1x16xf32, #tpu.memory_space<vmem>>, vector<1x16xf32>
    %18 = vector.broadcast %17 : vector<1x16xf32> to vector<8x16xf32>
    %19 = arith.addf %16, %18 : vector<8x16xf32>
    %c0_17 = arith.constant 0 : index
    %c0_18 = arith.constant 0 : index
    %20 = vector.load %arg8[%c0_17, %c0_18] : memref<8x16xf32, #tpu.memory_space<vmem>>, vector<8x16xf32>
    tpu.vector_store %arg8[%c0_17, %c0_18], %19 {strides = array<i32>} : memref<8x16xf32, #tpu.memory_space<vmem>>, vector<8x16xf32>,
    return
  }
  func.func @transform_0(%arg0: i32) -> (i32, i32) {
    %c0_i32 = arith.constant 0 : i32
    %c0_i32_0 = arith.constant 0 : i32
    return %arg0, %c0_i32 : i32, i32
  }
  func.func @transform_1(%arg0: i32) -> (i32, i32) {
    %c0_i32 = arith.constant 0 : i32
    %c0_i32_0 = arith.constant 0 : i32
    %c0_i32_1 = arith.constant 0 : i32
    return %c0_i32, %c0_i32_0 : i32, i32
  }
  func.func @transform_2(%arg0: i32) -> (i32, i32) {
    %c0_i32 = arith.constant 0 : i32
    %c0_i32_0 = arith.constant 0 : i32
    %c0_i32_1 = arith.constant 0 : i32
    return %c0_i32, %c0_i32_0 : i32, i32
  }
  func.func @transform_3(%arg0: i32) -> (i32, i32) {
    %c0_i32 = arith.constant 0 : i32
    %c0_i32_0 = arith.constant 0 : i32
    %c0_i32_1 = arith.constant 0 : i32
    return %c0_i32, %c0_i32_0 : i32, i32
  }
  func.func @transform_4(%arg0: i32) -> (i32, i32) {
    %c0_i32 = arith.constant 0 : i32
    %c0_i32_0 = arith.constant 0 : i32
    %c0_i32_1 = arith.constant 0 : i32
    return %c0_i32, %c0_i32_0 : i32, i32
  }
  func.func @transform_5(%arg0: i32) -> (i32, i32) {
    %c0_i32 = arith.constant 0 : i32
    %c0_i32_0 = arith.constant 0 : i32
    %c0_i32_1 = arith.constant 0 : i32
    return %c0_i32, %c0_i32_0 : i32, i32
  }
  func.func @transform_6(%arg0: i32) -> (i32, i32) {
    %c0_i32 = arith.constant 0 : i32
    %c0_i32_0 = arith.constant 0 : i32
    %c0_i32_1 = arith.constant 0 : i32
    return %c0_i32, %c0_i32_0 : i32, i32
  }
  func.func @transform_7(%arg0: i32) -> (i32, i32) {
    %c0_i32 = arith.constant 0 : i32
    %c0_i32_0 = arith.constant 0 : i32
    return %arg0, %c0_i32 : i32, i32
  }
}

</mosaic_0001>

<bundles_post_ra>
// kernel: tpu_custom_call.1
= control target key start
LH: loop header
LB: loop body
LE: loop exit
PB: predicated region body
PF: predicated region fallthrough
CT: control target
= control target key end

     0   :  { %12 = vsyncpa [#allocation3], 0  ;;  %s340_s0 = inlined_call_operand.vmem [shape: f32[8,32], index: 0, kind: input, shape index: {}]   ;;  %s341_s1 = inlined_call_operand.hbm [shape: f32[32,64], index: 1, kind: input, shape index: {}]   ;;  %s342_s2 = inlined_call_operand.vmem [shape: f32[1,64], index: 2, kind: input, shape index: {}]   ;;  %s343_s3 = inlined_call_operand.vmem [shape: f32[64,64], index: 3, kind: input, shape index: {}]   ;;  %s344_s4 = inlined_call_operand.vmem [shape: f32[1,64], index: 4, kind: input, shape index: {}]   ;;  %s345_s5 = inlined_call_operand.vmem [shape: f32[64,16], index: 5, kind: input, shape index: {}]   ;;  %s346_s6 = inlined_call_operand.vmem [shape: f32[1,16], index: 6, kind: input, shape index: {}]   ;;  %s347_s7 = inlined_call_operand.hbm [shape: f32[8,16], index: 7, kind: output, shape index: {}]  }
   0x1   :  { %13 = vsyncpa [#allocation4], 0  ;;  %s20_s26 = sshll.u32 %s341_s1, 4  ;;  %s230_s27 = smov [#allocation2]   ;;  %s21_s26 = int_to_ptr.hbm [resolvable:$true] %s20_s26 }
   0x2   :  { %s22_s28 = sshll.u32 %s230_s27, 4  ;;  %s231_s29 = smov 128   ;;  %s23_s28 = int_to_ptr.vmem [resolvable:$true] %s22_s28 }
   0x3   :  { %s232_s30 = smov 8  }
   0x4   :  { %28 = dma.hbm_to_vmem [thread:$0]  %s21_s26, 512, %s23_s28, [#allocation3], %s231_s29, %s231_s29, %s232_s30  }
   0x5   :  { %226 = dma.done.wait [#allocation3], 512  }
   0x6   :  { %227 = vsyncadd [#allocation3], 4294966784  ;;  %v47_v0 = vld [vmem:[#allocation2 + $0x18] sm:$0xff]  ;;  %v46_v1 = vld [vmem:[#allocation2 + $0x10] sm:$0xff]  ;;  %vm52_vm0 = vcmask 261120   ;;  %vm89_vm1 = vcmask 523264  }
   0x7   :  { %68 = vmatpush.msra.mxu0 %v47_v0  ;;  %v84_v2 = vld [vmem:[%s343_s3 + $0x38] sm:$0xff]  ;;  %v45_v3 = vld [vmem:[#allocation2 + $0x8] sm:$0xff]  ;;  %v83_v4 = vld [vmem:[%s343_s3 + $0x30] sm:$0xff]  ;;  %s233_s20 = smov [#allocation5]   ;;  %s158_s23 = sshll.u32 %s347_s7, 4  ;;  %vm149_vm2 = vcmask 130048   ;;  %s159_s23 = int_to_ptr.hbm [resolvable:$true] %s158_s23 }
   0x8   :  { %101 = vmatpush.msra.mxu1 %v84_v2  ;;  %v82_v5 = vld [vmem:[%s343_s3 + $0x28] sm:$0xff]  ;;  %v44_v6 = vld [vmem:[#allocation2] sm:$0xff]  ;;  %v80_v9 = vld [vmem:[%s343_s3 + $0x18] sm:$0xff] }
   0x9   :  { %69 = vmatpush.msra.mxu0 %v46_v1  ;;  %v43_v7 = vld [vmem:[%s340_s0] sm:$0xff]  ;;  %v79_v10 = vld [vmem:[%s343_s3 + $0x10] sm:$0xff]  ;;  %v78_v11 = vld [vmem:[%s343_s3 + $0x8] sm:$0xff]  ;;  %s156_s0 = sshll.u32 %s233_s20, 4  ;;  %s157_s0 = int_to_ptr.vmem [resolvable:$true] %s156_s0 }
   0xa   :  { %102 = vmatpush.msra.mxu1 %v83_v4  ;;  %v81_v8 = vld [vmem:[%s343_s3 + $0x20] sm:$0xff]  ;;  %v121_v13 = vld [vmem:[%s345_s5 + $0x38] sm:$0xff]  ;;  %v120_v14 = vld [vmem:[%s345_s5 + $0x30] sm:$0xff] }
   0xb   :  { %70 = vmatpush.msra.mxu0 %v45_v3  ;;  %v77_v12 = vld [vmem:[%s343_s3] sm:$0xff]  ;;  %137 = vmatpush.msra.mxu2 %v121_v13  ;;  %v119_v15 = vld [vmem:[%s345_s5 + $0x28] sm:$0xff]  ;;  %v117_v17 = vld [vmem:[%s345_s5 + $0x18] sm:$0xff] }
   0xc   :  { %103 = vmatpush.msra.mxu1 %v82_v5  ;;  %v118_v16 = vld [vmem:[%s345_s5 + $0x20] sm:$0xff]  ;;  %v116_v22 = vld [vmem:[%s345_s5 + $0x10] sm:$0xff]  ;;  %v115_v23 = vld [vmem:[%s345_s5 + $0x8] sm:$0xff] }
   0xd   :  { %71 = vmatpush.msra.mxu0 %v44_v6  ;;  %138 = vmatpush.msra.mxu2 %v120_v14  ;;  %v175_v18 = vld [vmem:[%s342_s2] ss:$0 sm:$0xff] }
   0xe   :  { %168 = vmatmul.msk.f32.vlgmr.msra.gmra.mxu0 %vm52_vm0, %v43_v7  ;;  %104 = vmatpush.msra.mxu1 %v81_v8  ;;  %v114_v24 = vld [vmem:[%s345_s5] sm:$0xff] }
   0xf   :  { %139 = vmatpush.msra.mxu2 %v119_v15  ;;  %v176_v25 = vld [vmem:[%s344_s4] ss:$0 sm:$0xff] }
  0x10   :  { %105 = vmatpush.msra.mxu1 %v80_v9  ;;  %v177_v29 = vld [vmem:[%s346_s6] ss:$0 sm:$0xff] }
  0x11   :  { %140 = vmatpush.msra.mxu2 %v118_v16 }
  0x12   :  { %106 = vmatpush.msra.mxu1 %v79_v10 }
  0x13   :  { %141 = vmatpush.msra.mxu2 %v117_v17 }
  0x14   :  { %107 = vmatpush.msra.mxu1 %v78_v11 }
  0x15   :  { %142 = vmatpush.msra.mxu2 %v116_v22 }
  0x16   :  { %108 = vmatpush.msra.mxu1 %v77_v12 }
  0x17   :  { %143 = vmatpush.msra.mxu2 %v115_v23 }
  0x19   :  { %144 = vmatpush.msra.mxu2 %v114_v24 }
  0x8b   :  { %v73_v19 = vpop.f32.mrf.mxu0 }
  0x8c   :  { %v74_v20 = vadd.f32 %v175_v18, %v73_v19 }
  0x8e   :  { %v76_v21 = vmax.f32 %v74_v20, 0.0 }
  0x90   :  { %169 = vmatmul.msk.f32.vlgmr.msra.gmra.mxu1 %vm89_vm1, %v76_v21 }
 0x10d   :  { %v110_v26 = vpop.f32.mrf.mxu1 }
 0x10e   :  { %v111_v27 = vadd.f32 %v176_v25, %v110_v26 }
 0x110   :  { %v113_v28 = vmax.f32 %v111_v27, 0.0 }
 0x112   :  { %170 = vmatmul.msk.f32.vlgmr.msra.gmra.mxu2 %vm89_vm1, %v113_v28 }
 0x195   :  { %v146_v30 = vpop.f32.mrf.mxu2 }
 0x196   :  { %v147_v31 = vadd.f32 %v177_v29, %v146_v30 }
 0x198   :  { %150 = vst.msk [vmem:[#allocation5] sm:$0xff] %vm149_vm2, %v147_v31 }
 0x199   :  { %161 = dma.vmem_to_hbm [thread:$0]  %s157_s0, 128, %s159_s23, [#allocation4]  }
 0x19a   :  { %228 = dma.done.wait [#allocation4], 128  }
 0x19b   :  { %229 = vsyncadd [#allocation4], 4294967168 }
 0x19c   :  { %166 = vsyncpa [#allocation3], 1 }
 0x19d   :  { %167 = vsyncpa [#allocation4], 1 }

// kernel: tpu_custom_call.1
= control target key start
LH: loop header
LB: loop body
LE: loop exit
PB: predicated region body
PF: predicated region fallthrough
CT: control target
= control target key end

     0   :  { %12 = vsyncpa [#allocation3], 0  ;;  %s340_s0 = inlined_call_operand.vmem [shape: f32[8,32], index: 0, kind: input, shape index: {}]   ;;  %s341_s1 = inlined_call_operand.hbm [shape: f32[32,64], index: 1, kind: input, shape index: {}]   ;;  %s342_s2 = inlined_call_operand.vmem [shape: f32[1,64], index: 2, kind: input, shape index: {}]   ;;  %s343_s3 = inlined_call_operand.vmem [shape: f32[64,64], index: 3, kind: input, shape index: {}]   ;;  %s344_s4 = inlined_call_operand.vmem [shape: f32[1,64], index: 4, kind: input, shape index: {}]   ;;  %s345_s5 = inlined_call_operand.vmem [shape: f32[64,16], index: 5, kind: input, shape index: {}]   ;;  %s346_s6 = inlined_call_operand.vmem [shape: f32[1,16], index: 6, kind: input, shape index: {}]   ;;  %s347_s7 = inlined_call_operand.hbm [shape: f32[8,16], index: 7, kind: output, shape index: {}]  }
   0x1   :  { %13 = vsyncpa [#allocation4], 0  ;;  %s20_s26 = sshll.u32 %s341_s1, 4  ;;  %s230_s27 = smov [#allocation2]   ;;  %s21_s26 = int_to_ptr.hbm [resolvable:$true] %s20_s26 }
   0x2   :  { %s22_s28 = sshll.u32 %s230_s27, 4  ;;  %s231_s29 = smov 128   ;;  %s23_s28 = int_to_ptr.vmem [resolvable:$true] %s22_s28 }
   0x3   :  { %s232_s30 = smov 8  }
   0x4   :  { %28 = dma.hbm_to_vmem [thread:$0]  %s21_s26, 512, %s23_s28, [#allocation3], %s231_s29, %s231_s29, %s232_s30  }
   0x5   :  { %226 = dma.done.wait [#allocation3], 512  }
   0x6   :  { %227 = vsyncadd [#allocation3], 4294966784  ;;  %v47_v0 = vld [vmem:[#allocation2 + $0x18] sm:$0xff]  ;;  %v46_v1 = vld [vmem:[#allocation2 + $0x10] sm:$0xff]  ;;  %vm52_vm0 = vcmask 261120   ;;  %vm89_vm1 = vcmask 523264  }
   0x7   :  { %68 = vmatpush.msra.mxu0 %v47_v0  ;;  %v84_v2 = vld [vmem:[%s343_s3 + $0x38] sm:$0xff]  ;;  %v45_v3 = vld [vmem:[#allocation2 + $0x8] sm:$0xff]  ;;  %v83_v4 = vld [vmem:[%s343_s3 + $0x30] sm:$0xff]  ;;  %s233_s20 = smov [#allocation5]   ;;  %s158_s23 = sshll.u32 %s347_s7, 4  ;;  %vm149_vm2 = vcmask 130048   ;;  %s159_s23 = int_to_ptr.hbm [resolvable:$true] %s158_s23 }
   0x8   :  { %101 = vmatpush.msra.mxu1 %v84_v2  ;;  %v82_v5 = vld [vmem:[%s343_s3 + $0x28] sm:$0xff]  ;;  %v44_v6 = vld [vmem:[#allocation2] sm:$0xff]  ;;  %v80_v9 = vld [vmem:[%s343_s3 + $0x18] sm:$0xff] }
   0x9   :  { %69 = vmatpush.msra.mxu0 %v46_v1  ;;  %v43_v7 = vld [vmem:[%s340_s0] sm:$0xff]  ;;  %v79_v10 = vld [vmem:[%s343_s3 + $0x10] sm:$0xff]  ;;  %v78_v11 = vld [vmem:[%s343_s3 + $0x8] sm:$0xff]  ;;  %s156_s0 = sshll.u32 %s233_s20, 4  ;;  %s157_s0 = int_to_ptr.vmem [resolvable:$true] %s156_s0 }
   0xa   :  { %102 = vmatpush.msra.mxu1 %v83_v4  ;;  %v81_v8 = vld [vmem:[%s343_s3 + $0x20] sm:$0xff]  ;;  %v121_v13 = vld [vmem:[%s345_s5 + $0x38] sm:$0xff]  ;;  %v120_v14 = vld [vmem:[%s345_s5 + $0x30] sm:$0xff] }
   0xb   :  { %70 = vmatpush.msra.mxu0 %v45_v3  ;;  %v77_v12 = vld [vmem:[%s343_s3] sm:$0xff]  ;;  %137 = vmatpush.msra.mxu2 %v121_v13  ;;  %v119_v15 = vld [vmem:[%s345_s5 + $0x28] sm:$0xff]  ;;  %v117_v17 = vld [vmem:[%s345_s5 + $0x18] sm:$0xff] }
   0xc   :  { %103 = vmatpush.msra.mxu1 %v82_v5  ;;  %v118_v16 = vld [vmem:[%s345_s5 + $0x20] sm:$0xff]  ;;  %v116_v22 = vld [vmem:[%s345_s5 + $0x10] sm:$0xff]  ;;  %v115_v23 = vld [vmem:[%s345_s5 + $0x8] sm:$0xff] }
   0xd   :  { %71 = vmatpush.msra.mxu0 %v44_v6  ;;  %138 = vmatpush.msra.mxu2 %v120_v14  ;;  %v175_v18 = vld [vmem:[%s342_s2] ss:$0 sm:$0xff] }
   0xe   :  { %168 = vmatmul.msk.f32.vlgmr.msra.gmra.mxu0 %vm52_vm0, %v43_v7  ;;  %104 = vmatpush.msra.mxu1 %v81_v8  ;;  %v114_v24 = vld [vmem:[%s345_s5] sm:$0xff] }
   0xf   :  { %139 = vmatpush.msra.mxu2 %v119_v15  ;;  %v176_v25 = vld [vmem:[%s344_s4] ss:$0 sm:$0xff] }
  0x10   :  { %105 = vmatpush.msra.mxu1 %v80_v9  ;;  %v177_v29 = vld [vmem:[%s346_s6] ss:$0 sm:$0xff] }
  0x11   :  { %140 = vmatpush.msra.mxu2 %v118_v16 }
  0x12   :  { %106 = vmatpush.msra.mxu1 %v79_v10 }
  0x13   :  { %141 = vmatpush.msra.mxu2 %v117_v17 }
  0x14   :  { %107 = vmatpush.msra.mxu1 %v78_v11 }
  0x15   :  { %142 = vmatpush.msra.mxu2 %v116_v22 }
  0x16   :  { %108 = vmatpush.msra.mxu1 %v77_v12 }
  0x17   :  { %143 = vmatpush.msra.mxu2 %v115_v23 }
  0x19   :  { %144 = vmatpush.msra.mxu2 %v114_v24 }
  0x8b   :  { %v73_v19 = vpop.f32.mrf.mxu0 }
  0x8c   :  { %v74_v20 = vadd.f32 %v175_v18, %v73_v19 }
  0x8e   :  { %v76_v21 = vmax.f32 %v74_v20, 0.0 }
  0x90   :  { %169 = vmatmul.msk.f32.vlgmr.msra.gmra.mxu1 %vm89_vm1, %v76_v21 }
 0x10d   :  { %v110_v26 = vpop.f32.mrf.mxu1 }
 0x10e   :  { %v111_v27 = vadd.f32 %v176_v25, %v110_v26 }
 0x110   :  { %v113_v28 = vmax.f32 %v111_v27, 0.0 }
 0x112   :  { %170 = vmatmul.msk.f32.vlgmr.msra.gmra.mxu2 %vm89_vm1, %v113_v28 }
 0x195   :  { %v146_v30 = vpop.f32.mrf.mxu2 }
 0x196   :  { %v147_v31 = vadd.f32 %v177_v29, %v146_v30 }
 0x198   :  { %150 = vst.msk [vmem:[#allocation5] sm:$0xff] %vm149_vm2, %v147_v31 }
 0x199   :  { %161 = dma.vmem_to_hbm [thread:$0]  %s157_s0, 128, %s159_s23, [#allocation4]  }
 0x19a   :  { %228 = dma.done.wait [#allocation4], 128  }
 0x19b   :  { %229 = vsyncadd [#allocation4], 4294967168 }
 0x19c   :  { %166 = vsyncpa [#allocation3], 1 }
 0x19d   :  { %167 = vsyncpa [#allocation4], 1 }

</bundles_post_ra>
